<compile_context>
chip_gen: v5e
topology: v5e:2x2
jax: 0.10.0
libtpu: 0.0.40
codegen_flags: <defaults>
</compile_context>

<pallas_src>
import jax
import jax.numpy as jnp
from jax.experimental import pallas as pl
from jax.experimental.pallas import tpu as pltpu


_C_PAD = 128          # lane-dense padded class dimension for the kernel output
_NEG_BIG = -1e9       # additive "no edge" bias
_VMEM = pl.BlockSpec(memory_space=pltpu.MemorySpace.VMEM)


def _round_up(n, m):
    return ((n + m - 1) // m) * m


# ----------------------------------------------------------------------------
# Fused kernel: [GATConv + ReLU] * num_layers  ->  lin1 + ReLU -> lin2 -> log_softmax
# ----------------------------------------------------------------------------
def _make_fused_gat_kernel(num_layers, hidden, layout):
    """`layout` is a static tuple of (row_offset, rows, cols) into the packed
    parameter buffer, in the order: (w_aug, bias) per layer, then w1, b1, w2p, b2p."""

    def kernel(x_ref, adjb_ref, p_ref, o_ref):
        x = x_ref[...]                                 # (N, F) f32
        li = 0
        for _ in range(num_layers):
            w_off, w_r, w_c = layout[li]; li += 1
            b_off, b_r, b_c = layout[li]; li += 1
            w_aug = p_ref[w_off:w_off + w_r, 0:w_c]    # (F_in, H+2) = [W | W@a_dst | W@a_src]
            bias = p_ref[b_off:b_off + b_r, 0:b_c]     # (1, H)

            # One MXU op (bf16 operands, f32 accumulate) gives features + both
            # attention scores.
            hds = jnp.dot(x.astype(jnp.bfloat16), w_aug.astype(jnp.bfloat16),
                          preferred_element_type=jnp.float32)     # (N, H+2)
            h = hds[:, :hidden]                        # (N, H)
            d = hds[:, hidden:hidden + 1]              # (N, 1)  dest score
            s = hds[:, hidden + 1:hidden + 2]          # (N, 1)  source score

            # e[i, j] = LeakyReLU(d[i] + s[j], 0.2), then additive edge mask.
            e = d + s.T                                # (N_dst, N_src)
            e = jnp.where(e > 0.0, e, 0.2 * e)
            # bf16 bias added at point of use (no hoisted f32 (N,N) copy).
            e = e + adjb_ref[...].astype(jnp.float32)  # non-edges -> -1e9

            # softmax over incoming edges (every row has a self loop -> finite max)
            m = jnp.max(e, axis=-1, keepdims=True)
            p = jnp.exp(e - m)                         # masked entries underflow to 0
            inv = pl.reciprocal(jnp.sum(p, axis=-1, keepdims=True), approx=True)
            attn = p * inv

            # aggregate (bf16 MXU operands), add conv bias, ReLU
            agg = jnp.dot(attn.astype(jnp.bfloat16), h.astype(jnp.bfloat16),
                          preferred_element_type=jnp.float32)
            x = jnp.maximum(agg + bias, 0.0)
            # TODO(synk): training-mode dropout not implemented (eval mode = identity).

        w1_off, w1_r, w1_c = layout[li]; li += 1
        b1_off, b1_r, b1_c = layout[li]; li += 1
        w2_off, w2_r, w2_c = layout[li]; li += 1
        b2_off, b2_r, b2_c = layout[li]; li += 1
        w1 = p_ref[w1_off:w1_off + w1_r, 0:w1_c]
        b1 = p_ref[b1_off:b1_off + b1_r, 0:b1_c]
        w2 = p_ref[w2_off:w2_off + w2_r, 0:w2_c]       # (H, 128) lane-padded
        b2 = p_ref[b2_off:b2_off + b2_r, 0:b2_c]       # (1, 128), pads = -1e30

        # MLP head: ReLU(lin1(x)) -> lin2 -> log_softmax (padded classes at -1e30)
        hmid = jnp.maximum(
            jnp.dot(x.astype(jnp.bfloat16), w1.astype(jnp.bfloat16),
                    preferred_element_type=jnp.float32) + b1, 0.0)
        z = jnp.dot(hmid.astype(jnp.bfloat16), w2.astype(jnp.bfloat16),
                    preferred_element_type=jnp.float32) + b2
        mz = jnp.max(z, axis=-1, keepdims=True)
        zs = z - mz
        lse = jnp.log(jnp.sum(jnp.exp(zs), axis=-1, keepdims=True))
        o_ref[...] = zs - lse

    return kernel


# ----------------------------------------------------------------------------
# Wrappers / one-time host-side prep
# ----------------------------------------------------------------------------
def build_adj_bias(edge_index, num_nodes):
    """bf16 additive bias: 0 where edge src->dst (plus self loops), -1e9 elsewhere."""
    src, dst = edge_index[0], edge_index[1]
    mask = jnp.zeros((num_nodes, num_nodes), jnp.bool_)
    mask = mask.at[dst, src].set(True)
    idx = jnp.arange(num_nodes)
    mask = mask.at[idx, idx].set(True)
    return jnp.where(mask, 0.0, _NEG_BIG).astype(jnp.bfloat16)


def prepare_gat_params(convs, w1, b1, w2, b2, num_classes):
    """Fold attention vectors into the feature matmul, lane-pad the classifier,
    and pack every parameter into ONE (rows, 128) f32 buffer (single DMA)."""
    tensors = []
    for (w, a_src, a_dst, b) in convs:
        w_aug = jnp.concatenate([w, w @ a_dst, w @ a_src], axis=1)   # (F_in, H+2)
        tensors.append(w_aug.astype(jnp.float32))
        tensors.append(b.astype(jnp.float32))
    tensors.append(w1.astype(jnp.float32))
    tensors.append(b1.astype(jnp.float32))
    c = num_classes
    w2p = jnp.zeros((w2.shape[0], _C_PAD), jnp.float32).at[:, :c].set(w2)
    b2p = jnp.full((1, _C_PAD), -1e30, jnp.float32).at[:, :c].set(b2)
    tensors.append(w2p)
    tensors.append(b2p)

    layout = []
    row = 0
    for t in tensors:
        r, cdim = t.shape
        assert cdim <= _C_PAD
        layout.append((row, r, cdim))
        row += _round_up(r, 8)                 # 8-row (sublane) aligned sections
    total_rows = _round_up(row, 8)
    packed = jnp.zeros((total_rows, _C_PAD), jnp.float32)
    for t, (off, r, cdim) in zip(tensors, layout):
        packed = packed.at[off:off + r, :cdim].set(t)
    return packed, tuple(layout)


def make_gat_forward(num_layers, hidden, num_classes, layout):
    kernel = _make_fused_gat_kernel(num_layers, hidden, layout)

    def forward(x, adj_bias, packed_params):
        n = x.shape[0]
        out_pad = pl.pallas_call(
            kernel,
            out_shape=jax.ShapeDtypeStruct((n, _C_PAD), jnp.float32),
            in_specs=[_VMEM, _VMEM, _VMEM],
            out_specs=_VMEM,
        )(x, adj_bias, packed_params)
        return out_pad[:, :num_classes]

    return jax.jit(forward)


# ----------------------------------------------------------------------------
# Main
# ----------------------------------------------------------------------------
if __name__ == "__main__":
    # Small synthetic graph / model sizes
    N_NODES = 64
    NUM_FEATURES = 16
    HIDDEN_DIM = 32
    HIDDEN_DIM_POST = 32
    NUM_CLASSES = 8
    NUM_LAYERS = 2

    key = jax.random.PRNGKey(0)
    keys = jax.random.split(key, 16)

    # Node features
    x = jax.random.normal(keys[0], (N_NODES, NUM_FEATURES), dtype=jnp.float32)

    # Edge index: bidirectional ring + a few long-range edges (shape (2, E))
    idx = jnp.arange(N_NODES)
    src = jnp.concatenate([idx, (idx + 1) % N_NODES, idx, (idx + 7) % N_NODES])
    dst = jnp.concatenate([(idx + 1) % N_NODES, idx, (idx + 7) % N_NODES, idx])
    edge_index = jnp.stack([src, dst]).astype(jnp.int32)

    # Deterministic parameter init (GATConv: lin weight, att_src, att_dst, bias)
    convs = []
    in_dim = NUM_FEATURES
    k = 1
    for _ in range(NUM_LAYERS):
        w = jax.random.normal(keys[k], (in_dim, HIDDEN_DIM), jnp.float32) * (1.0 / jnp.sqrt(in_dim)); k += 1
        a_src = jax.random.normal(keys[k], (HIDDEN_DIM, 1), jnp.float32) * 0.1; k += 1
        a_dst = jax.random.normal(keys[k], (HIDDEN_DIM, 1), jnp.float32) * 0.1; k += 1
        b = jnp.zeros((1, HIDDEN_DIM), jnp.float32)
        convs.append((w, a_src, a_dst, b))
        in_dim = HIDDEN_DIM

    w1 = jax.random.normal(keys[k], (HIDDEN_DIM, HIDDEN_DIM_POST), jnp.float32) * (1.0 / jnp.sqrt(HIDDEN_DIM)); k += 1
    b1 = jnp.zeros((1, HIDDEN_DIM_POST), jnp.float32)
    w2 = jax.random.normal(keys[k], (HIDDEN_DIM_POST, NUM_CLASSES), jnp.float32) * (1.0 / jnp.sqrt(HIDDEN_DIM_POST)); k += 1
    b2 = jnp.zeros((1, NUM_CLASSES), jnp.float32)

    # One-time prep hoisted out of the forward pass.
    adj_bias = build_adj_bias(edge_index, N_NODES)
    packed_params, layout = prepare_gat_params(convs, w1, b1, w2, b2, NUM_CLASSES)

    forward = make_gat_forward(NUM_LAYERS, HIDDEN_DIM, NUM_CLASSES, layout)
    out = forward(x, adj_bias, packed_params)
    out = jax.block_until_ready(out)

    assert out.shape == (N_NODES, NUM_CLASSES)
    # log_softmax rows must exponentiate-sum to ~1
    row_sums = jnp.sum(jnp.exp(out), axis=-1)
    assert bool(jnp.all(jnp.abs(row_sums - 1.0) < 1e-4))
    print("KERNEL_OK")
</pallas_src>

<mosaic_0001>
module attributes {stable_mosaic.version = 11 : i64} {
  func.func @kernel(%arg0: memref<64x16xf32, #tpu.memory_space<vmem>>, %arg1: memref<64x64xbf16, #tpu.memory_space<vmem>>, %arg2: memref<144x128xf32, #tpu.memory_space<vmem>>, %arg3: memref<64x128xf32, #tpu.memory_space<vmem>>) attributes {dimension_semantics = [], scalar_prefetch = 0 : i64, scratch_operands = 0 : i64, tpu.core_type = #tpu.core_type<tc>} {
    %c0 = arith.constant 0 : index
    %c0_0 = arith.constant 0 : index
    %0 = vector.load %arg0[%c0, %c0_0] : memref<64x16xf32, #tpu.memory_space<vmem>>, vector<64x16xf32>
    %c0_1 = arith.constant 0 : index
    %c0_2 = arith.constant 0 : index
    %1 = vector.load %arg2[%c0_1, %c0_2] : memref<144x128xf32, #tpu.memory_space<vmem>>, vector<16x34xf32>
    %c16 = arith.constant 16 : index
    %c0_3 = arith.constant 0 : index
    %2 = vector.load %arg2[%c16, %c0_3] : memref<144x128xf32, #tpu.memory_space<vmem>>, vector<1x32xf32>
    %3 = arith.truncf %0 : vector<64x16xf32> to vector<64x16xbf16>
    %4 = arith.truncf %1 : vector<16x34xf32> to vector<16x34xbf16>
    %cst = arith.constant dense<0.000000e+00> : vector<64x34xf32>
    %5 = tpu.matmul %3, %4, %cst {dimension_numbers = #tpu.dot_dimension_numbers<[1], [0], [0], [1], [0, 0, 1, 1], [], []>} : vector<64x16xbf16>, vector<16x34xbf16>, vector<64x34xf32> -> vector<64x34xf32>
    %6 = vector.extract_strided_slice %5 {offsets = [0, 0], sizes = [64, 32], strides = [1, 1]} : vector<64x34xf32> to vector<64x32xf32>
    %7 = vector.extract_strided_slice %5 {offsets = [0, 32], sizes = [64, 1], strides = [1, 1]} : vector<64x34xf32> to vector<64x1xf32>
    %8 = vector.extract_strided_slice %5 {offsets = [0, 33], sizes = [64, 1], strides = [1, 1]} : vector<64x34xf32> to vector<64x1xf32>
    %9 = tpu.transpose %8, [1, 0] : vector<64x1xf32> -> vector<1x64xf32>
    %10 = vector.broadcast %7 : vector<64x1xf32> to vector<64x64xf32>
    %11 = vector.broadcast %9 : vector<1x64xf32> to vector<64x64xf32>
    %12 = arith.addf %10, %11 : vector<64x64xf32>
    %cst_4 = arith.constant 0.000000e+00 : f32
    %13 = vector.broadcast %cst_4 : f32 to vector<64x64xf32>
    %14 = arith.cmpf ogt, %12, %13 : vector<64x64xf32>
    %cst_5 = arith.constant 2.000000e-01 : f32
    %15 = vector.broadcast %cst_5 : f32 to vector<64x64xf32>
    %16 = arith.mulf %15, %12 : vector<64x64xf32>
    %17 = arith.select %14, %12, %16 : vector<64x64xi1>, vector<64x64xf32>
    %c0_6 = arith.constant 0 : index
    %c0_7 = arith.constant 0 : index
    %18 = vector.load %arg1[%c0_6, %c0_7] : memref<64x64xbf16, #tpu.memory_space<vmem>>, vector<64x64xbf16>
    %19 = arith.extf %18 : vector<64x64xbf16> to vector<64x64xf32>
    %20 = arith.addf %17, %19 : vector<64x64xf32>
    %cst_8 = arith.constant dense<0xFF800000> : vector<64xf32>
    %21 = vector.multi_reduction <maximumf>, %20, %cst_8 [1] : vector<64x64xf32> to vector<64xf32>
    %22 = vector.shape_cast %21 : vector<64xf32> to vector<64x1xf32>
    %23 = vector.broadcast %22 : vector<64x1xf32> to vector<64x64xf32>
    %24 = arith.subf %20, %23 : vector<64x64xf32>
    %25 = math.exp %24 : vector<64x64xf32>
    %cst_9 = arith.constant dense<0.000000e+00> : vector<64xf32>
    %26 = vector.multi_reduction <add>, %25, %cst_9 [1] : vector<64x64xf32> to vector<64xf32>
    %27 = vector.shape_cast %26 : vector<64xf32> to vector<64x1xf32>
    %28 = tpu.reciprocal %27 {approx = true} : vector<64x1xf32> -> vector<64x1xf32>
    %29 = vector.broadcast %28 : vector<64x1xf32> to vector<64x64xf32>
    %30 = arith.mulf %25, %29 : vector<64x64xf32>
    %31 = arith.truncf %30 : vector<64x64xf32> to vector<64x64xbf16>
    %32 = arith.truncf %6 : vector<64x32xf32> to vector<64x32xbf16>
    %cst_10 = arith.constant dense<0.000000e+00> : vector<64x32xf32>
    %33 = tpu.matmul %31, %32, %cst_10 {dimension_numbers = #tpu.dot_dimension_numbers<[1], [0], [0], [1], [0, 0, 1, 1], [], []>} : vector<64x64xbf16>, vector<64x32xbf16>, vector<64x32xf32> -> vector<64x32xf32>
    %34 = vector.broadcast %2 : vector<1x32xf32> to vector<64x32xf32>
    %35 = arith.addf %33, %34 : vector<64x32xf32>
    %cst_11 = arith.constant 0.000000e+00 : f32
    %36 = vector.broadcast %cst_11 : f32 to vector<64x32xf32>
    %37 = arith.maximumf %35, %36 : vector<64x32xf32>
    %c24 = arith.constant 24 : index
    %c0_12 = arith.constant 0 : index
    %38 = vector.load %arg2[%c24, %c0_12] : memref<144x128xf32, #tpu.memory_space<vmem>>, vector<32x34xf32>
    %c56 = arith.constant 56 : index
    %c0_13 = arith.constant 0 : index
    %39 = vector.load %arg2[%c56, %c0_13] : memref<144x128xf32, #tpu.memory_space<vmem>>, vector<1x32xf32>
    %40 = arith.truncf %37 : vector<64x32xf32> to vector<64x32xbf16>
    %41 = arith.truncf %38 : vector<32x34xf32> to vector<32x34xbf16>
    %cst_14 = arith.constant dense<0.000000e+00> : vector<64x34xf32>
    %42 = tpu.matmul %40, %41, %cst_14 {dimension_numbers = #tpu.dot_dimension_numbers<[1], [0], [0], [1], [0, 0, 1, 1], [], []>} : vector<64x32xbf16>, vector<32x34xbf16>, vector<64x34xf32> -> vector<64x34xf32>
    %43 = vector.extract_strided_slice %42 {offsets = [0, 0], sizes = [64, 32], strides = [1, 1]} : vector<64x34xf32> to vector<64x32xf32>
    %44 = vector.extract_strided_slice %42 {offsets = [0, 32], sizes = [64, 1], strides = [1, 1]} : vector<64x34xf32> to vector<64x1xf32>
    %45 = vector.extract_strided_slice %42 {offsets = [0, 33], sizes = [64, 1], strides = [1, 1]} : vector<64x34xf32> to vector<64x1xf32>
    %46 = tpu.transpose %45, [1, 0] : vector<64x1xf32> -> vector<1x64xf32>
    %47 = vector.broadcast %44 : vector<64x1xf32> to vector<64x64xf32>
    %48 = vector.broadcast %46 : vector<1x64xf32> to vector<64x64xf32>
    %49 = arith.addf %47, %48 : vector<64x64xf32>
    %cst_15 = arith.constant 0.000000e+00 : f32
    %50 = vector.broadcast %cst_15 : f32 to vector<64x64xf32>
    %51 = arith.cmpf ogt, %49, %50 : vector<64x64xf32>
    %cst_16 = arith.constant 2.000000e-01 : f32
    %52 = vector.broadcast %cst_16 : f32 to vector<64x64xf32>
    %53 = arith.mulf %52, %49 : vector<64x64xf32>
    %54 = arith.select %51, %49, %53 : vector<64x64xi1>, vector<64x64xf32>
    %c0_17 = arith.constant 0 : index
    %c0_18 = arith.constant 0 : index
    %55 = vector.load %arg1[%c0_17, %c0_18] : memref<64x64xbf16, #tpu.memory_space<vmem>>, vector<64x64xbf16>
    %56 = arith.extf %55 : vector<64x64xbf16> to vector<64x64xf32>
    %57 = arith.addf %54, %56 : vector<64x64xf32>
    %cst_19 = arith.constant dense<0xFF800000> : vector<64xf32>
    %58 = vector.multi_reduction <maximumf>, %57, %cst_19 [1] : vector<64x64xf32> to vector<64xf32>
    %59 = vector.shape_cast %58 : vector<64xf32> to vector<64x1xf32>
    %60 = vector.broadcast %59 : vector<64x1xf32> to vector<64x64xf32>
    %61 = arith.subf %57, %60 : vector<64x64xf32>
    %62 = math.exp %61 : vector<64x64xf32>
    %cst_20 = arith.constant dense<0.000000e+00> : vector<64xf32>
    %63 = vector.multi_reduction <add>, %62, %cst_20 [1] : vector<64x64xf32> to vector<64xf32>
    %64 = vector.shape_cast %63 : vector<64xf32> to vector<64x1xf32>
    %65 = tpu.reciprocal %64 {approx = true} : vector<64x1xf32> -> vector<64x1xf32>
    %66 = vector.broadcast %65 : vector<64x1xf32> to vector<64x64xf32>
    %67 = arith.mulf %62, %66 : vector<64x64xf32>
    %68 = arith.truncf %67 : vector<64x64xf32> to vector<64x64xbf16>
    %69 = arith.truncf %43 : vector<64x32xf32> to vector<64x32xbf16>
    %cst_21 = arith.constant dense<0.000000e+00> : vector<64x32xf32>
    %70 = tpu.matmul %68, %69, %cst_21 {dimension_numbers = #tpu.dot_dimension_numbers<[1], [0], [0], [1], [0, 0, 1, 1], [], []>} : vector<64x64xbf16>, vector<64x32xbf16>, vector<64x32xf32> -> vector<64x32xf32>
    %71 = vector.broadcast %39 : vector<1x32xf32> to vector<64x32xf32>
    %72 = arith.addf %70, %71 : vector<64x32xf32>
    %cst_22 = arith.constant 0.000000e+00 : f32
    %73 = vector.broadcast %cst_22 : f32 to vector<64x32xf32>
    %74 = arith.maximumf %72, %73 : vector<64x32xf32>
    %c64 = arith.constant 64 : index
    %c0_23 = arith.constant 0 : index
    %75 = vector.load %arg2[%c64, %c0_23] : memref<144x128xf32, #tpu.memory_space<vmem>>, vector<32x32xf32>
    %c96 = arith.constant 96 : index
    %c0_24 = arith.constant 0 : index
    %76 = vector.load %arg2[%c96, %c0_24] : memref<144x128xf32, #tpu.memory_space<vmem>>, vector<1x32xf32>
    %c104 = arith.constant 104 : index
    %c0_25 = arith.constant 0 : index
    %77 = vector.load %arg2[%c104, %c0_25] : memref<144x128xf32, #tpu.memory_space<vmem>>, vector<32x128xf32>
    %c136 = arith.constant 136 : index
    %c0_26 = arith.constant 0 : index
    %78 = vector.load %arg2[%c136, %c0_26] : memref<144x128xf32, #tpu.memory_space<vmem>>, vector<1x128xf32>
    %79 = arith.truncf %74 : vector<64x32xf32> to vector<64x32xbf16>
    %80 = arith.truncf %75 : vector<32x32xf32> to vector<32x32xbf16>
    %cst_27 = arith.constant dense<0.000000e+00> : vector<64x32xf32>
    %81 = tpu.matmul %79, %80, %cst_27 {dimension_numbers = #tpu.dot_dimension_numbers<[1], [0], [0], [1], [0, 0, 1, 1], [], []>} : vector<64x32xbf16>, vector<32x32xbf16>, vector<64x32xf32> -> vector<64x32xf32>
    %82 = vector.broadcast %76 : vector<1x32xf32> to vector<64x32xf32>
    %83 = arith.addf %81, %82 : vector<64x32xf32>
    %cst_28 = arith.constant 0.000000e+00 : f32
    %84 = vector.broadcast %cst_28 : f32 to vector<64x32xf32>
    %85 = arith.maximumf %83, %84 : vector<64x32xf32>
    %86 = arith.truncf %85 : vector<64x32xf32> to vector<64x32xbf16>
    %87 = arith.truncf %77 : vector<32x128xf32> to vector<32x128xbf16>
    %cst_29 = arith.constant dense<0.000000e+00> : vector<64x128xf32>
    %88 = tpu.matmul %86, %87, %cst_29 {dimension_numbers = #tpu.dot_dimension_numbers<[1], [0], [0], [1], [0, 0, 1, 1], [], []>} : vector<64x32xbf16>, vector<32x128xbf16>, vector<64x128xf32> -> vector<64x128xf32>
    %89 = vector.broadcast %78 : vector<1x128xf32> to vector<64x128xf32>
    %90 = arith.addf %88, %89 : vector<64x128xf32>
    %cst_30 = arith.constant dense<0xFF800000> : vector<64xf32>
    %91 = vector.multi_reduction <maximumf>, %90, %cst_30 [1] : vector<64x128xf32> to vector<64xf32>
    %92 = vector.shape_cast %91 : vector<64xf32> to vector<64x1xf32>
    %93 = vector.broadcast %92 : vector<64x1xf32> to vector<64x128xf32>
    %94 = arith.subf %90, %93 : vector<64x128xf32>
    %95 = math.exp %94 : vector<64x128xf32>
    %cst_31 = arith.constant dense<0.000000e+00> : vector<64xf32>
    %96 = vector.multi_reduction <add>, %95, %cst_31 [1] : vector<64x128xf32> to vector<64xf32>
    %97 = vector.shape_cast %96 : vector<64xf32> to vector<64x1xf32>
    %98 = math.log %97 : vector<64x1xf32>
    %99 = vector.broadcast %98 : vector<64x1xf32> to vector<64x128xf32>
    %100 = arith.subf %94, %99 : vector<64x128xf32>
    %c0_32 = arith.constant 0 : index
    %c0_33 = arith.constant 0 : index
    %101 = vector.load %arg3[%c0_32, %c0_33] : memref<64x128xf32, #tpu.memory_space<vmem>>, vector<64x128xf32>
    tpu.vector_store %arg3[%c0_32, %c0_33], %100 {strides = array<i32>} : memref<64x128xf32, #tpu.memory_space<vmem>>, vector<64x128xf32>,
    return
  }
}

</mosaic_0001>

<bundles_post_ra>
// kernel: forward.1
= control target key start
LH: loop header
LB: loop body
LE: loop exit
PB: predicated region body
PF: predicated region fallthrough
CT: control target
= control target key end

     0   :  { %8 = vsyncpa [#allocation3], 0  ;;  %s1115_s15 = smov [#allocation2]   ;;  %s1116_s17 = smov 128   ;;  %s1342_s0 = inlined_call_operand.vmem [shape: f32[64,16], index: 0, kind: input, shape index: {}]   ;;  %s1343_s1 = inlined_call_operand.vmem [shape: bf16[64,64], index: 1, kind: input, shape index: {}]   ;;  %s1344_s2 = inlined_call_operand.hbm [shape: f32[144,128], index: 2, kind: input, shape index: {}]   ;;  %s1345_s3 = inlined_call_operand.vmem [shape: f32[64,128], index: 3, kind: output, shape index: {}]  }
   0x1   :  { %s17_s14 = sshll.u32 %s1344_s2, 4  ;;  %s19_s16 = sshll.u32 %s1115_s15, 4  ;;  %s18_s14 = int_to_ptr.hbm [resolvable:$true] %s17_s14  ;;  %s20_s16 = int_to_ptr.vmem [resolvable:$true] %s19_s16 }
   0x2   :  { %s1117_s18 = smov 8  }
   0x3   :  { %25 = dma.hbm_to_vmem [thread:$0]  %s18_s14, 2304, %s20_s16, [#allocation3], %s1116_s17, %s1116_s17, %s1117_s18  }
   0x4   :  { %1113 = dma.done.wait [#allocation3], 2304  }
   0x5   :  { %1114 = vsyncadd [#allocation3], 4294964992  ;;  %v39_v0 = vld [vmem:[#allocation2] sm:$0xff]  ;;  %v40_v1 = vld [vmem:[#allocation2 + $0x8] sm:$0xff]  ;;  %vm47_vm0 = vcmask 130048   ;;  %v1118_v9 = vmov 32  }
   0x6   :  { %v31_v2 = vld [vmem:[%s1342_s0] sm:$0xff]  ;;  %v46_v3 = vpack.c.bf16 %v40_v1, %v39_v0  ;;  %v32_v4 = vld [vmem:[%s1342_s0 + $0x8] sm:$0xff]  ;;  %v33_v5 = vld [vmem:[%s1342_s0 + $0x10] sm:$0xff]  ;;  %986 = vset.pattern.permute.xlu2 %v1118_v9  ;;  %987 = vset.pattern.permute.xlu1 %v1118_v9  ;;  %s1119_s7 = smov 95   ;;  %vm242_vm4 = vcmask 523264   ;;  %vm400_vm10 = vcmask 261120  }
   0x7   :  { %v34_v6 = vld [vmem:[%s1342_s0 + $0x18] sm:$0xff]  ;;  %v42_v7 = vpack.c.bf16 %v32_v4, %v31_v2  ;;  %988 = vset.pattern.permute.xlu0 %v1118_v9  ;;  %v35_v10 = vld [vmem:[%s1342_s0 + $0x20] sm:$0xff]  ;;  %v36_v11 = vld [vmem:[%s1342_s0 + $0x28] sm:$0xff] }
   0x8   :  { %v43_v8 = vpack.c.bf16 %v34_v6, %v33_v5  ;;  %67 = vmatpush.bf16.msra.mxu0 %v46_v3  ;;  %975 = vmatpush.bf16.msra.mxu3 %v46_v3  ;;  %v44_v12 = vpack.c.bf16 %v36_v11, %v35_v10  ;;  %v37_v13 = vld [vmem:[%s1342_s0 + $0x30] sm:$0xff]  ;;  %v38_v14 = vld [vmem:[%s1342_s0 + $0x38] sm:$0xff]  ;;  %v1189_v44 = vld [vmem:[%s1343_s1] sm:$0xff]  }
   0x9   :  { %v45_v15 = vpack.c.bf16 %v38_v14, %v37_v13  ;;  %v1184_v43 = vld [vmem:[%s1343_s1 + $0x10] sm:$0xff]   ;;  %v959_v49 = vunpack.c.h.bf16 %v1189_v44  ;;  %v958_v50 = vunpack.c.l.bf16 %v1189_v44  ;;  %v1214_v1 = vld [vmem:[%s1343_s1 + $0x8] sm:$0xff]  }
   0xa   :  { %v966_v48 = vunpack.c.l.bf16 %v1184_v43  ;;  %v963_v3 = vunpack.c.h.bf16 %v1214_v1 }
   0xb   :  { %932 = vmatmul.msk.bf16.vlgmr.msra.gmra.mxu0 %vm47_vm0, %v42_v7  ;;  %933 = vmatmul.msk.bf16.vlgmr.msra.gmra.mxu3 %vm47_vm0, %v43_v8  ;;  %v962_v8 = vunpack.c.l.bf16 %v1214_v1 }
  0x1b   :  { %934 = vmatmul.msk.bf16.gmra.mxu3 %vm47_vm0, %v44_v12 }
  0x2b   :  { %935 = vmatmul.msk.bf16.gmra.mxu3 %vm47_vm0, %v45_v15  ;;  %v967_v15 = vunpack.c.h.bf16 %v1184_v43 }
  0x88   :  { %v69_v16 = vpop.f32.mrf.mxu0 }
  0x89   :  { %154 = vperm.xlu2 %986, %v69_v16   ;;  %97 = vrot.lane.b32.xlu0 %v69_v16, %s1119_s7 }
  0x8e   :  { %v74_v17 = vpop.f32.mrf.mxu3 }
  0x8f   :  { %101 = vrot.lane.b32.xlu1 %v74_v17, %s1119_s7 }
  0x90   :  { %v71_v18 = vpop.f32.mrf.mxu0 }
  0x91   :  { %99 = vrot.lane.b32.xlu0 %v71_v18, %s1119_s7  ;;  %v335_v27 = vpack.c.bf16 %v71_v18, %v69_v16 }
  0x96   :  { %v76_v19 = vpop.f32.mrf.mxu3 }
  0x97   :  { %162 = vperm.xlu1 %987, %v74_v17   ;;  %166 = vperm.xlu2 %986, %v76_v19   ;;  %v336_v26 = vpack.c.bf16 %v76_v19, %v74_v17 }
  0x99   :  { %158 = vperm.xlu0 %988, %v71_v18  }
  0x9e   :  { %v79_v20 = vpop.f32.mrf.mxu3 }
  0x9f   :  { %103 = vrot.lane.b32.xlu1 %v76_v19, %s1119_s7  ;;  %105 = vrot.lane.b32.xlu2 %v79_v20, %s1119_s7 }
  0xa6   :  { %v81_v21 = vpop.f32.mrf.mxu3 }
  0xa7   :  { %170 = vperm.xlu2 %986, %v79_v20   ;;  %v337_v25 = vpack.c.bf16 %v81_v21, %v79_v20 }
  0xae   :  { %v1172_v22 = vpop.f32.mrf.mxu3 }
  0xaf   :  { %107 = vrot.lane.b32.xlu2 %v81_v21, %s1119_s7  ;;  %109 = vrot.lane.b32.xlu0 %v1172_v22, %s1119_s7 }
  0xb6   :  { %v86_v23 = vpop.f32.mrf.mxu3 }
  0xb7   :  { %174 = vperm.xlu0 %988, %v81_v21   ;;  %111 = vrot.lane.b32.xlu1 %v86_v23, %s1119_s7  ;;  %v338_v24 = vpack.c.bf16 %v86_v23, %v1172_v22  ;;  %v1233_v21 = vld [vmem:[%s1343_s1 + $0x18] sm:$0xff]  }
  0xb9   :  { %356 = vmatpush.bf16.msra.mxu1 %v338_v24 }
  0xbd   :  { %357 = vmatpush.bf16.msra.mxu1 %v337_v25  ;;  %v970_v25 = vunpack.c.l.bf16 %v1233_v21 }
  0xc1   :  { %358 = vmatpush.bf16.msra.mxu1 %v336_v26 }
  0xc5   :  { %359 = vmatpush.bf16.msra.mxu1 %v335_v27 }
  0xe3   :  { %v155_v29 = vpop.permute.xlu2 %154 }
  0xf1   :  { %v167_v32 = vpop.permute.xlu2 %166 }
  0xf9   :  { %v106_v34 = vpop.permute.xlu2 %105 }
  0xfb   :  { %v98_v28 = vpop.permute.xlu0 %97 }
  0xfc   :  { %121 = vxpose.xlu1.b32.start [1/8] (short) (narrow) %v98_v28, 8 }
 0x101   :  { %v102_v30 = vpop.permute.xlu1 %101  ;;  %v171_v36 = vpop.permute.xlu2 %170 }
 0x103   :  { %v100_v31 = vpop.permute.xlu0 %99 }
 0x104   :  { %122 = vxpose.xlu1.b32.cont [2/8] (short) (narrow) %v100_v31, 8 }
 0x109   :  { %v163_v33 = vpop.permute.xlu1 %162  ;;  %v108_v37 = vpop.permute.xlu2 %107 }
 0x10b   :  { %v159_v38 = vpop.permute.xlu0 %158 }
 0x10c   :  { %123 = vxpose.xlu1.b32.cont [3/8] (short) (narrow) %v102_v30, 8 }
 0x111   :  { %v104_v35 = vpop.permute.xlu1 %103 }
 0x114   :  { %124 = vxpose.xlu1.b32.cont [4/8] (short) (narrow) %v104_v35, 8 }
 0x11c   :  { %125 = vxpose.xlu1.b32.cont [5/8] (short) (narrow) %v106_v34, 8  ;;  %v971_v34 = vunpack.c.h.bf16 %v1233_v21 }
 0x121   :  { %v110_v39 = vpop.permute.xlu0 %109 }
 0x124   :  { %126 = vxpose.xlu1.b32.cont [6/8] (short) (narrow) %v108_v37, 8 }
 0x129   :  { %v112_v40 = vpop.permute.xlu1 %111  ;;  %v175_v6 = vpop.permute.xlu0 %174 }
 0x12c   :  { %127 = vxpose.xlu1.b32.cont [7/8] (short) (narrow) %v110_v39, 8 }
 0x134   :  { %128 = vxpose.xlu1.b32.end [8/8] (short) (narrow) %v112_v40, 8 }
 0x1a0   :  { %v137_v41 = vpop.trf.xlu1 }
 0x1a1   :  { %v1179_v42 = vperm.slane %v137_v41, 0 }
 0x1a3   :  { %v190_v45 = vadd.f32 %v1179_v42, %v171_v36  ;;  %v187_v46 = vadd.f32 %v1179_v42, %v159_v38  ;;  %v186_v47 = vadd.f32 %v1179_v42, %v155_v29  ;;  %v189_v63 = vadd.f32 %v1179_v42, %v167_v32 }
 0x1a4   :  { %v188_v2 = vadd.f32 %v1179_v42, %v163_v33  ;;  %v191_v10 = vadd.f32 %v1179_v42, %v175_v6 }
 0x1a5   :  { %vm198_vm1 = vcmp.gt.f32.partialorder %v190_v45, 0.0  ;;  %v206_v51 = vmul.f32 0.2, %v190_v45  ;;  %vm195_vm2 = vcmp.gt.f32.partialorder %v187_v46, 0.0  ;;  %v203_v52 = vmul.f32 0.2, %v187_v46 }
 0x1a6   :  { %vm194_vm3 = vcmp.gt.f32.partialorder %v186_v47, 0.0  ;;  %v202_v53 = vmul.f32 0.2, %v186_v47  ;;  %v205_v0 = vmul.f32 0.2, %v189_v63  ;;  %vm197_vm5 = vcmp.gt.f32.partialorder %v189_v63, 0.0 }
 0x1a7   :  { %v214_v54 = vsel %vm198_vm1, %v190_v45, %v206_v51  ;;  %v211_v55 = vsel %vm195_vm2, %v187_v46, %v203_v52  ;;  %v204_v5 = vmul.f32 0.2, %v188_v2  ;;  %vm196_vm6 = vcmp.gt.f32.partialorder %v188_v2, 0.0 }
 0x1a8   :  { %v1199_v56 = vadd.f32 %v966_v48, %v214_v54  ;;  %v235_v57 = vadd.f32 %v959_v49, %v211_v55  ;;  %v210_v58 = vsel %vm194_vm3, %v186_v47, %v202_v53  ;;  %v213_v4 = vsel %vm197_vm5, %v189_v63, %v205_v0 }
 0x1a9   :  { %v234_v59 = vadd.f32 %v958_v50, %v210_v58  ;;  %v237_v7 = vadd.f32 %v963_v3, %v213_v4  ;;  %v212_v9 = vsel %vm196_vm6, %v188_v2, %v204_v5  ;;  %v207_v13 = vmul.f32 0.2, %v191_v10 }
 0x1aa   :  { %v255_v60 = vsel %vm242_vm4, %v1199_v56, -inf  ;;  %v246_v61 = vsel %vm242_vm4, %v235_v57, -inf  ;;  %v236_v12 = vadd.f32 %v962_v8, %v212_v9  ;;  %vm199_vm7 = vcmp.gt.f32.partialorder %v191_v10, 0.0 }
 0x1ab   :  { %256 = vmax.xlane.f32.xlu1 %v255_v60  ;;  %247 = vmax.xlane.f32.xlu0 %v246_v61  ;;  %v243_v62 = vsel %vm242_vm4, %v234_v59, -inf  ;;  %v252_v11 = vsel %vm242_vm4, %v237_v7, -inf  ;;  %v215_v16 = vsel %vm199_vm7, %v191_v10, %v207_v13 }
 0x1ac   :  { %244 = vmax.xlane.f32.xlu2 %v243_v62  ;;  %v249_v14 = vsel %vm242_vm4, %v236_v12, -inf  ;;  %v239_v17 = vadd.f32 %v967_v15, %v215_v16 }
 0x1ae   :  { %v258_v18 = vsel %vm242_vm4, %v239_v17, -inf }
 0x1bf   :  { %182 = vperm.xlu0 %988, %v86_v23  }
 0x1c4   :  { %178 = vperm.xlu2 %986, %v1172_v22  }
 0x1e9   :  { %253 = vmax.xlane.f32.xlu0 %v252_v11 }
 0x1ed   :  { %250 = vmax.xlane.f32.xlu2 %v249_v14 }
 0x1f5   :  { %259 = vmax.xlane.f32.xlu2 %v258_v18 }
 0x21e   :  { %v248_v24 = vpop.xlane.xlu0 %247  ;;  %v257_v52 = vpop.xlane.xlu1 %256 }
 0x21f   :  { %v245_v19 = vpop.xlane.xlu2 %244  ;;  %v268_v31 = vsub.f32 %v235_v57, %v248_v24  ;;  %v271_v55 = vsub.f32 %v1199_v56, %v257_v52  ;;  %v389_v52 = vld [vmem:[#allocation2 + $0x18] sm:$0xff] }
 0x220   :  { %v267_v20 = vsub.f32 %v234_v59, %v245_v19 }
 0x221   :  { %v277_v36 = vmul.f32 1.442695, %v268_v31  ;;  %v283_v59 = vmul.f32 1.442695, %v271_v55 }
 0x222   :  { %v275_v26 = vmul.f32 1.442695, %v267_v20 }
 0x224   :  { %993 = vpow2.f32 %v275_v26 }
 0x225   :  { %995 = vpow2.f32 %v277_v36 }
 0x227   :  { %v179_v22 = vpop.permute.xlu2 %178 }
 0x228   :  { %v192_v23 = vadd.f32 %v1179_v42, %v179_v22 }
 0x22a   :  { %vm200_vm8 = vcmp.gt.f32.partialorder %v192_v23, 0.0  ;;  %v208_v27 = vmul.f32 0.2, %v192_v23  ;;  %v994_v35 = vpop.eup %993 }
 0x22b   :  { %v291_v39 = vsel %vm242_vm4, %v994_v35, 0.0  ;;  %v996_v45 = vpop.eup %995 }
 0x22c   :  { %v216_v28 = vsel %vm200_vm8, %v192_v23, %v208_v27 }
 0x22d   :  { %v240_v29 = vadd.f32 %v970_v25, %v216_v28 }
 0x22f   :  { %v261_v30 = vsel %vm242_vm4, %v240_v29, -inf }
 0x230   :  { %262 = vmax.xlane.f32.xlu0 %v261_v30 }
 0x231   :  { %v183_v32 = vpop.permute.xlu0 %182 }
 0x232   :  { %v193_v33 = vadd.f32 %v1179_v42, %v183_v32  ;;  %v294_v42 = vsel %vm242_vm4, %v996_v45, 0.0 }
 0x234   :  { %vm201_vm9 = vcmp.gt.f32.partialorder %v193_v33, 0.0  ;;  %v209_v37 = vmul.f32 0.2, %v193_v33 }
 0x236   :  { %v217_v38 = vsel %vm201_vm9, %v193_v33, %v209_v37 }
 0x237   :  { %v241_v40 = vadd.f32 %v971_v34, %v217_v38 }
 0x238   :  { %292 = vadd.xlane.f32.xlu0 %v291_v39 }
 0x239   :  { %v264_v41 = vsel %vm242_vm4, %v241_v40, -inf }
 0x23a   :  { %265 = vmax.xlane.f32.xlu2 %v264_v41 }
 0x242   :  { %295 = vadd.xlane.f32.xlu2 %v294_v42  ;;  %v391_v42 = vld [vmem:[#allocation2 + $0x28] sm:$0xff] }
 0x25c   :  { %v254_v46 = vpop.xlane.xlu0 %253 }
 0x25d   :  { %v270_v47 = vsub.f32 %v237_v7, %v254_v46  ;;  %v392_v46 = vld [vmem:[#allocation2 + $0x30] sm:$0xff] }
 0x25f   :  { %v281_v51 = vmul.f32 1.442695, %v270_v47 }
 0x260   :  { %v251_v53 = vpop.xlane.xlu2 %250 }
 0x261   :  { %997 = vpow2.f32 %v281_v51  ;;  %v269_v54 = vsub.f32 %v236_v12, %v251_v53  ;;  %v399_v51 = vpack.c.bf16 %v392_v46, %v391_v42  ;;  %v390_v53 = vld [vmem:[#allocation2 + $0x20] sm:$0xff] }
 0x263   :  { %v279_v57 = vmul.f32 1.442695, %v269_v54  ;;  %419 = vmatpush.bf16.msrb.mxu0 %v399_v51  ;;  %976 = vmatpush.bf16.msrb.mxu1 %v399_v51  ;;  %v398_v54 = vpack.c.bf16 %v390_v53, %v389_v52 }
 0x264   :  { %977 = vmatpush.bf16.msra.mxu2 %v399_v51 }
 0x265   :  { %999 = vpow2.f32 %v279_v57 }
 0x266   :  { %1001 = vpow2.f32 %v283_v59 }
 0x267   :  { %v998_v58 = vpop.eup %997  ;;  %420 = vmatpush.bf16.msrb.mxu0 %v398_v54  ;;  %978 = vmatpush.bf16.msrb.mxu1 %v398_v54 }
 0x268   :  { %v260_v60 = vpop.xlane.xlu2 %259  ;;  %v300_v61 = vsel %vm242_vm4, %v998_v58, 0.0  ;;  %979 = vmatpush.bf16.msra.mxu2 %v398_v54 }
 0x269   :  { %v272_v62 = vsub.f32 %v239_v17, %v260_v60  ;;  %301 = vadd.xlane.f32.xlu2 %v300_v61 }
 0x26b   :  { %v1000_v63 = vpop.eup %999  ;;  %v285_v0 = vmul.f32 1.442695, %v272_v62 }
 0x26c   :  { %v297_v2 = vsel %vm242_vm4, %v1000_v63, 0.0  ;;  %v1002_v4 = vpop.eup %1001 }
 0x26d   :  { %1003 = vpow2.f32 %v285_v0  ;;  %298 = vadd.xlane.f32.xlu0 %v297_v2  ;;  %v303_v56 = vsel %vm242_vm4, %v1002_v4, 0.0 }
 0x273   :  { %v1004_v5 = vpop.eup %1003 }
 0x274   :  { %v306_v6 = vsel %vm242_vm4, %v1004_v5, 0.0 }
 0x275   :  { %304 = vadd.xlane.f32.xlu0 %v303_v56  ;;  %307 = vadd.xlane.f32.xlu2 %v306_v6 }
 0x2a3   :  { %v263_v7 = vpop.xlane.xlu0 %262 }
 0x2a4   :  { %v273_v9 = vsub.f32 %v240_v29, %v263_v7 }
 0x2a6   :  { %v287_v10 = vmul.f32 1.442695, %v273_v9 }
 0x2a8   :  { %1005 = vpow2.f32 %v287_v10 }
 0x2ab   :  { %v293_v17 = vpop.xlane.xlu0 %292 }
 0x2ad   :  { %v266_v11 = vpop.xlane.xlu2 %265 }
 0x2ae   :  { %v1006_v12 = vpop.eup %1005  ;;  %v274_v13 = vsub.f32 %v241_v40, %v266_v11 }
 0x2af   :  { %v309_v14 = vsel %vm242_vm4, %v1006_v12, 0.0 }
 0x2b0   :  { %v289_v16 = vmul.f32 1.442695, %v274_v13  ;;  %310 = vadd.xlane.f32.xlu0 %v309_v14 }
 0x2b2   :  { %1007 = vpow2.f32 %v289_v16 }
 0x2b3   :  { %1009 = vrcp.f32 %v293_v17 }
 0x2b5   :  { %v296_v18 = vpop.xlane.xlu2 %295 }
 0x2b6   :  { %1011 = vrcp.f32 %v296_v18 }
 0x2b8   :  { %v1008_v19 = vpop.eup %1007 }
 0x2b9   :  { %v312_v20 = vsel %vm242_vm4, %v1008_v19, 0.0  ;;  %v1010_v22 = vpop.eup %1009 }
 0x2ba   :  { %313 = vadd.xlane.f32.xlu2 %v312_v20  ;;  %v323_v24 = vmul.f32 %v1010_v22, %v994_v35 }
 0x2bc   :  { %v1012_v23 = vpop.eup %1011 }
 0x2bd   :  { %v324_v26 = vmul.f32 %v1012_v23, %v996_v45 }
 0x2bf   :  { %v331_v27 = vpack.c.bf16 %v324_v26, %v323_v24 }
 0x2c1   :  { %936 = vmatmul.msk.bf16.vlgmr.msra.gmra.mxu1 %vm242_vm4, %v331_v27 }
 0x2dc   :  { %v302_v28 = vpop.xlane.xlu2 %301 }
 0x2dd   :  { %1013 = vrcp.f32 %v302_v28 }
 0x2e0   :  { %v299_v29 = vpop.xlane.xlu0 %298 }
 0x2e1   :  { %1015 = vrcp.f32 %v299_v29 }
 0x2e3   :  { %v1014_v30 = vpop.eup %1013 }
 0x2e4   :  { %v326_v33 = vmul.f32 %v1014_v30, %v998_v58 }
 0x2e7   :  { %v1016_v31 = vpop.eup %1015 }
 0x2e8   :  { %v325_v32 = vmul.f32 %v1016_v31, %v1000_v63  ;;  %v308_v36 = vpop.xlane.xlu2 %307  ;;  %v305_v37 = vpop.xlane.xlu0 %304  ;;  %v989_v63 = vld [vmem:[#allocation2 + $0x10] ss:$0 sm:$0xff] }
 0x2e9   :  { %1017 = vrcp.f32 %v308_v36 }
 0x2ea   :  { %v332_v38 = vpack.c.bf16 %v326_v33, %v325_v32  ;;  %1019 = vrcp.f32 %v305_v37 }
 0x2ec   :  { %937 = vmatmul.msk.bf16.gmra.mxu1 %vm242_vm4, %v332_v38 }
 0x2ef   :  { %v1018_v35 = vpop.eup %1017 }
 0x2f0   :  { %v1020_v39 = vpop.eup %1019  ;;  %v328_v41 = vmul.f32 %v1018_v35, %v1004_v5 }
 0x2f1   :  { %v327_v40 = vmul.f32 %v1020_v39, %v1002_v4 }
 0x2f3   :  { %v333_v45 = vpack.c.bf16 %v328_v41, %v327_v40 }
 0x2fc   :  { %938 = vmatmul.msk.bf16.gmra.mxu1 %vm242_vm4, %v333_v45 }
 0x323   :  { %v311_v47 = vpop.xlane.xlu0 %310 }
 0x324   :  { %1021 = vrcp.f32 %v311_v47 }
 0x32a   :  { %v1022_v57 = vpop.eup %1021 }
 0x32b   :  { %v329_v59 = vmul.f32 %v1022_v57, %v1006_v12 }
 0x32d   :  { %v314_v55 = vpop.xlane.xlu2 %313 }
 0x32e   :  { %1023 = vrcp.f32 %v314_v55 }
 0x334   :  { %v1024_v58 = vpop.eup %1023 }
 0x335   :  { %v330_v60 = vmul.f32 %v1024_v58, %v1008_v19 }
 0x337   :  { %v334_v61 = vpack.c.bf16 %v330_v60, %v329_v59 }
 0x339   :  { %939 = vmatmul.msk.bf16.gmra.mxu1 %vm242_vm4, %v334_v61 }
 0x33e   :  { %v361_v62 = vpop.f32.mrf.mxu1 }
 0x33f   :  { %v362_v0 = vadd.f32 %v989_v63, %v361_v62 }
 0x341   :  { %v381_v5 = vmax.f32 %v362_v0, 0.0 }
 0x346   :  { %v363_v2 = vpop.f32.mrf.mxu1 }
 0x347   :  { %v364_v4 = vadd.f32 %v989_v63, %v363_v2 }
 0x349   :  { %v382_v56 = vmax.f32 %v364_v4, 0.0 }
 0x34b   :  { %v394_v6 = vpack.c.bf16 %v382_v56, %v381_v5 }
 0x34d   :  { %940 = vmatmul.msk.bf16.vlgmr.msrb.gmra.mxu0 %vm400_vm10, %v394_v6 }
 0x369   :  { %v366_v7 = vpop.f32.mrf.mxu1 }
 0x36a   :  { %v367_v9 = vadd.f32 %v989_v63, %v366_v7 }
 0x36c   :  { %v383_v12 = vmax.f32 %v367_v9, 0.0 }
 0x371   :  { %v368_v10 = vpop.f32.mrf.mxu1 }
 0x372   :  { %v369_v11 = vadd.f32 %v989_v63, %v368_v10 }
 0x374   :  { %v384_v13 = vmax.f32 %v369_v11, 0.0 }
 0x376   :  { %v395_v14 = vpack.c.bf16 %v384_v13, %v383_v12 }
 0x378   :  { %941 = vmatmul.msk.bf16.vlgmr.msrb.gmra.mxu1 %vm400_vm10, %v395_v14 }
 0x379   :  { %v371_v16 = vpop.f32.mrf.mxu1 }
 0x37a   :  { %v372_v17 = vadd.f32 %v989_v63, %v371_v16 }
 0x37c   :  { %v385_v20 = vmax.f32 %v372_v17, 0.0 }
 0x381   :  { %v373_v18 = vpop.f32.mrf.mxu1 }
 0x382   :  { %v374_v19 = vadd.f32 %v989_v63, %v373_v18 }
 0x384   :  { %v386_v22 = vmax.f32 %v374_v19, 0.0 }
 0x386   :  { %v396_v23 = vpack.c.bf16 %v386_v22, %v385_v20 }
 0x388   :  { %942 = vmatmul.msk.bf16.vlgmr.msra.gmra.mxu2 %vm400_vm10, %v396_v23 }
 0x3b6   :  { %v376_v24 = vpop.f32.mrf.mxu1 }
 0x3b7   :  { %v377_v26 = vadd.f32 %v989_v63, %v376_v24 }
 0x3b9   :  { %v387_v29 = vmax.f32 %v377_v26, 0.0 }
 0x3be   :  { %v378_v27 = vpop.f32.mrf.mxu1 }
 0x3bf   :  { %v379_v28 = vadd.f32 %v989_v63, %v378_v27 }
 0x3c1   :  { %v388_v30 = vmax.f32 %v379_v28, 0.0 }
 0x3c3   :  { %v397_v31 = vpack.c.bf16 %v388_v30, %v387_v29 }
 0x3c5   :  { %943 = vmatmul.msk.bf16.gmra.mxu2 %vm400_vm10, %v397_v31 }
 0x3ca   :  { %v422_v32 = vpop.f32.mrf.mxu0 }
 0x3cb   :  { %450 = vrot.lane.b32.xlu0 %v422_v32, %s1119_s7 }
 0x3d2   :  { %v424_v33 = vpop.f32.mrf.mxu0 }
 0x3d3   :  { %507 = vperm.xlu0 %988, %v422_v32   ;;  %511 = vperm.xlu1 %987, %v424_v33   ;;  %v671_v46 = vpack.c.bf16 %v424_v33, %v422_v32 }
 0x3d4   :  { %452 = vrot.lane.b32.xlu2 %v424_v33, %s1119_s7 }
 0x3f5   :  { %v427_v36 = vpop.f32.mrf.mxu1 }
 0x3f6   :  { %454 = vrot.lane.b32.xlu0 %v427_v36, %s1119_s7  ;;  %515 = vperm.xlu2 %986, %v427_v36  }
 0x3fd   :  { %v429_v37 = vpop.f32.mrf.mxu1 }
 0x3fe   :  { %519 = vperm.xlu0 %988, %v429_v37   ;;  %456 = vrot.lane.b32.xlu2 %v429_v37, %s1119_s7  ;;  %v672_v38 = vpack.c.bf16 %v429_v37, %v427_v36 }
 0x40b   :  { %v432_v35 = vpop.f32.mrf.mxu2 }
 0x40c   :  { %458 = vrot.lane.b32.xlu0 %v432_v35, %s1119_s7 }
 0x413   :  { %v434_v39 = vpop.f32.mrf.mxu2 }
 0x414   :  { %523 = vperm.xlu0 %988, %v432_v35   ;;  %460 = vrot.lane.b32.xlu2 %v434_v39, %s1119_s7  ;;  %v673_v40 = vpack.c.bf16 %v434_v39, %v432_v35 }
 0x41c   :  { %527 = vperm.xlu0 %988, %v434_v39  }
 0x42e   :  { %v453_v51 = vpop.permute.xlu2 %452 }
 0x43d   :  { %v451_v47 = vpop.permute.xlu0 %450 }
 0x445   :  { %v508_v52 = vpop.permute.xlu0 %507  ;;  %v512_v4 = vpop.permute.xlu1 %511 }
 0x448   :  { %v437_v41 = vpop.f32.mrf.mxu2 }
 0x449   :  { %462 = vrot.lane.b32.xlu0 %v437_v41, %s1119_s7 }
 0x450   :  { %v439_v45 = vpop.f32.mrf.mxu2  ;;  %v516_v53 = vpop.permute.xlu2 %515 }
 0x451   :  { %464 = vrot.lane.b32.xlu2 %v439_v45, %s1119_s7  ;;  %v674_v42 = vpack.c.bf16 %v439_v45, %v437_v41 }
 0x453   :  { %692 = vmatpush.bf16.msrb.mxu3 %v674_v42 }
 0x457   :  { %693 = vmatpush.bf16.msrb.mxu3 %v673_v40 }
 0x458   :  { %v457_v55 = vpop.permute.xlu2 %456 }
 0x45b   :  { %694 = vmatpush.bf16.msrb.mxu3 %v672_v38 }
 0x45f   :  { %695 = vmatpush.bf16.msrb.mxu3 %v671_v46 }
 0x468   :  { %v455_v54 = vpop.permute.xlu0 %454 }
 0x46e   :  { %v461_v59 = vpop.permute.xlu2 %460 }
 0x470   :  { %v520_v57 = vpop.permute.xlu0 %519 }
 0x477   :  { %474 = vxpose.xlu2.b32.start [1/8] (short) (narrow) %v451_v47, 8 }
 0x47e   :  { %v459_v58 = vpop.permute.xlu0 %458 }
 0x47f   :  { %475 = vxpose.xlu2.b32.cont [2/8] (short) (narrow) %v453_v51, 8 }
 0x486   :  { %v524_v60 = vpop.permute.xlu0 %523 }
 0x487   :  { %476 = vxpose.xlu2.b32.cont [3/8] (short) (narrow) %v455_v54, 8 }
 0x48e   :  { %v528_v61 = vpop.permute.xlu0 %527 }
 0x48f   :  { %477 = vxpose.xlu2.b32.cont [4/8] (short) (narrow) %v457_v55, 8 }
 0x497   :  { %478 = vxpose.xlu2.b32.cont [5/8] (short) (narrow) %v459_v58, 8 }
 0x49f   :  { %479 = vxpose.xlu2.b32.cont [6/8] (short) (narrow) %v461_v59, 8 }
 0x4ab   :  { %v465_v63 = vpop.permute.xlu2 %464 }
 0x4bb   :  { %v463_v62 = vpop.permute.xlu0 %462 }
 0x4bc   :  { %480 = vxpose.xlu2.b32.cont [7/8] (short) (narrow) %v463_v62, 8 }
 0x4c4   :  { %481 = vxpose.xlu2.b32.end [8/8] (short) (narrow) %v465_v63, 8 }
 0x525   :  { %v490_v0 = vpop.trf.xlu2 }
 0x526   :  { %v538_v2 = vperm.slane %v490_v0, 0 }
 0x528   :  { %v540_v5 = vadd.f32 %v538_v2, %v512_v4  ;;  %v539_v56 = vadd.f32 %v538_v2, %v508_v52  ;;  %v543_v6 = vadd.f32 %v538_v2, %v524_v60  ;;  %v544_v27 = vadd.f32 %v538_v2, %v528_v61 }
 0x52a   :  { %vm548_vm11 = vcmp.gt.f32.partialorder %v540_v5, 0.0  ;;  %v556_v7 = vmul.f32 0.2, %v540_v5  ;;  %vm547_vm12 = vcmp.gt.f32.partialorder %v539_v56, 0.0  ;;  %v555_v9 = vmul.f32 0.2, %v539_v56 }
 0x52b   :  { %vm551_vm13 = vcmp.gt.f32.partialorder %v543_v6, 0.0  ;;  %v559_v10 = vmul.f32 0.2, %v543_v6  ;;  %v560_v29 = vmul.f32 0.2, %v544_v27  ;;  %vm552_vm0 = vcmp.gt.f32.partialorder %v544_v27, 0.0 }
 0x52c   :  { %v564_v11 = vsel %vm548_vm11, %v540_v5, %v556_v7  ;;  %v563_v12 = vsel %vm547_vm12, %v539_v56, %v555_v9 }
 0x52d   :  { %v572_v13 = vadd.f32 %v959_v49, %v564_v11  ;;  %v571_v14 = vadd.f32 %v958_v50, %v563_v12  ;;  %v567_v16 = vsel %vm551_vm13, %v543_v6, %v559_v10  ;;  %v542_v49 = vadd.f32 %v538_v2, %v520_v57 }
 0x52e   :  { %v1278_v19 = vadd.f32 %v966_v48, %v567_v16  ;;  %v541_v50 = vadd.f32 %v538_v2, %v516_v53  ;;  %v568_v31 = vsel %vm552_vm0, %v544_v27, %v560_v29 }
 0x52f   :  { %v582_v17 = vsel %vm242_vm4, %v572_v13, -inf  ;;  %v579_v18 = vsel %vm242_vm4, %v571_v14, -inf  ;;  %v558_v44 = vmul.f32 0.2, %v542_v49  ;;  %vm550_vm14 = vcmp.gt.f32.partialorder %v542_v49, 0.0 }
 0x530   :  { %583 = vmax.xlane.f32.xlu0 %v582_v17  ;;  %580 = vmax.xlane.f32.xlu1 %v579_v18  ;;  %v591_v20 = vsel %vm242_vm4, %v1278_v19, -inf  ;;  %v557_v23 = vmul.f32 0.2, %v541_v50  ;;  %vm549_vm15 = vcmp.gt.f32.partialorder %v541_v50, 0.0  ;;  %v576_v32 = vadd.f32 %v967_v15, %v568_v31 }
 0x531   :  { %v566_v22 = vsel %vm550_vm14, %v542_v49, %v558_v44 }
 0x532   :  { %v574_v24 = vadd.f32 %v963_v3, %v566_v22  ;;  %v565_v26 = vsel %vm549_vm15, %v541_v50, %v557_v23  ;;  %v594_v33 = vsel %vm242_vm4, %v576_v32, -inf }
 0x533   :  { %v573_v28 = vadd.f32 %v962_v8, %v565_v26 }
 0x534   :  { %v588_v48 = vsel %vm242_vm4, %v574_v24, -inf }
 0x535   :  { %592 = vmax.xlane.f32.xlu2 %v591_v20  ;;  %v585_v30 = vsel %vm242_vm4, %v573_v28, -inf }
 0x544   :  { %535 = vperm.xlu0 %988, %v439_v45  }
 0x549   :  { %531 = vperm.xlu1 %987, %v437_v41  }
 0x56e   :  { %589 = vmax.xlane.f32.xlu0 %v588_v48 }
 0x573   :  { %586 = vmax.xlane.f32.xlu1 %v585_v30 }
 0x57b   :  { %595 = vmax.xlane.f32.xlu1 %v594_v33 }
 0x5a3   :  { %v584_v3 = vpop.xlane.xlu0 %583  ;;  %v581_v36 = vpop.xlane.xlu1 %580 }
 0x5a4   :  { %v604_v37 = vsub.f32 %v572_v13, %v584_v3  ;;  %v603_v8 = vsub.f32 %v571_v14, %v581_v36 }
 0x5a6   :  { %v613_v39 = vmul.f32 1.442695, %v604_v37  ;;  %v611_v43 = vmul.f32 1.442695, %v603_v8 }
 0x5a8   :  { %1025 = vpow2.f32 %v613_v39  ;;  %v593_v60 = vpop.xlane.xlu2 %592 }
 0x5a9   :  { %1027 = vpow2.f32 %v611_v43  ;;  %v728_v43 = vld [vmem:[#allocation2 + $0x58] sm:$0xff] }
 0x5ae   :  { %v1026_v52 = vpop.eup %1025 }
 0x5af   :  { %v630_v54 = vsel %vm242_vm4, %v1026_v52, 0.0 }
 0x5b6   :  { %v536_v38 = vpop.permute.xlu0 %535 }
 0x5b7   :  { %v546_v35 = vadd.f32 %v538_v2, %v536_v38 }
 0x5b9   :  { %vm554_vm1 = vcmp.gt.f32.partialorder %v546_v35, 0.0  ;;  %v562_v1 = vmul.f32 0.2, %v546_v35 }
 0x5bb   :  { %v532_v40 = vpop.permute.xlu1 %531  ;;  %v570_v41 = vsel %vm554_vm1, %v546_v35, %v562_v1 }
 0x5bc   :  { %v545_v45 = vadd.f32 %v538_v2, %v532_v40  ;;  %v578_v42 = vadd.f32 %v971_v34, %v570_v41  ;;  %v1028_v34 = vpop.eup %1027 }
 0x5bd   :  { %v627_v55 = vsel %vm242_vm4, %v1028_v34, 0.0 }
 0x5be   :  { %vm553_vm2 = vcmp.gt.f32.partialorder %v545_v45, 0.0  ;;  %v561_v15 = vmul.f32 0.2, %v545_v45  ;;  %v600_v46 = vsel %vm242_vm4, %v578_v42, -inf }
 0x5bf   :  { %601 = vmax.xlane.f32.xlu1 %v600_v46  ;;  %v725_v46 = vld [vmem:[#allocation2 + $0x40] sm:$0xff] }
 0x5c0   :  { %v569_v47 = vsel %vm553_vm2, %v545_v45, %v561_v15 }
 0x5c1   :  { %v577_v51 = vadd.f32 %v970_v25, %v569_v47  ;;  %v607_v25 = vsub.f32 %v1278_v19, %v593_v60  ;;  %v726_v47 = vld [vmem:[#allocation2 + $0x48] sm:$0xff] }
 0x5c3   :  { %v597_v53 = vsel %vm242_vm4, %v577_v51, -inf  ;;  %v619_v0 = vmul.f32 1.442695, %v607_v25 }
 0x5c4   :  { %598 = vmax.xlane.f32.xlu0 %v597_v53 }
 0x5c7   :  { %631 = vadd.xlane.f32.xlu1 %v630_v54 }
 0x5cc   :  { %628 = vadd.xlane.f32.xlu0 %v627_v55 }
 0x5e1   :  { %v590_v57 = vpop.xlane.xlu0 %589 }
 0x5e2   :  { %v606_v58 = vsub.f32 %v574_v24, %v590_v57 }
 0x5e4   :  { %v617_v59 = vmul.f32 1.442695, %v606_v58  ;;  %v990_v58 = vld [vmem:[#allocation2 + $0x38] ss:$0 sm:$0xff] }
 0x5e6   :  { %1029 = vpow2.f32 %v617_v59  ;;  %v587_v61 = vpop.xlane.xlu1 %586 }
 0x5e7   :  { %v605_v21 = vsub.f32 %v573_v28, %v587_v61 }
 0x5e9   :  { %v615_v62 = vmul.f32 1.442695, %v605_v21 }
 0x5eb   :  { %1031 = vpow2.f32 %v615_v62 }
 0x5ec   :  { %v1030_v63 = vpop.eup %1029  ;;  %1033 = vpow2.f32 %v619_v0 }
 0x5ed   :  { %v636_v2 = vsel %vm242_vm4, %v1030_v63, 0.0 }
 0x5ee   :  { %637 = vadd.xlane.f32.xlu1 %v636_v2  ;;  %v596_v4 = vpop.xlane.xlu1 %595 }
 0x5ef   :  { %v608_v5 = vsub.f32 %v576_v32, %v596_v4 }
 0x5f1   :  { %v1032_v56 = vpop.eup %1031  ;;  %v621_v6 = vmul.f32 1.442695, %v608_v5 }
 0x5f2   :  { %v633_v7 = vsel %vm242_vm4, %v1032_v56, 0.0  ;;  %v1034_v9 = vpop.eup %1033 }
 0x5f3   :  { %1035 = vpow2.f32 %v621_v6  ;;  %634 = vadd.xlane.f32.xlu0 %v633_v7  ;;  %v639_v11 = vsel %vm242_vm4, %v1034_v9, 0.0 }
 0x5f9   :  { %v1036_v10 = vpop.eup %1035 }
 0x5fa   :  { %v642_v12 = vsel %vm242_vm4, %v1036_v10, 0.0 }
 0x5fb   :  { %640 = vadd.xlane.f32.xlu0 %v639_v11  ;;  %643 = vadd.xlane.f32.xlu1 %v642_v12 }
 0x632   :  { %v602_v13 = vpop.xlane.xlu1 %601 }
 0x633   :  { %v610_v14 = vsub.f32 %v578_v42, %v602_v13  ;;  %v727_v42 = vld [vmem:[#allocation2 + $0x50] sm:$0xff] }
 0x634   :  { %v740_v15 = vpack.c.bf16 %v728_v43, %v727_v42 }
 0x635   :  { %v625_v16 = vmul.f32 1.442695, %v610_v14 }
 0x636   :  { %760 = vmatpush.bf16.msra.mxu0 %v740_v15 }
 0x637   :  { %1037 = vpow2.f32 %v625_v16  ;;  %v599_v17 = vpop.xlane.xlu0 %598  ;;  %v732_v16 = vld [vmem:[#allocation2 + $0x78] sm:$0xff] }
 0x638   :  { %v609_v18 = vsub.f32 %v577_v51, %v599_v17  ;;  %v733_v17 = vld [vmem:[#allocation2 + $0x80] sm:$0xff] }
 0x63a   :  { %v623_v19 = vmul.f32 1.442695, %v609_v18  ;;  %v632_v20 = vpop.xlane.xlu1 %631  ;;  %v796_v18 = vpack.c.bf16 %v733_v17, %v732_v16 }
 0x63c   :  { %1039 = vpow2.f32 %v623_v19  ;;  %816 = vmatpush.bf16.msrb.mxu2 %v796_v18 }
 0x63d   :  { %v1038_v49 = vpop.eup %1037  ;;  %1041 = vrcp.f32 %v632_v20  ;;  %v730_v20 = vld [vmem:[#allocation2 + $0x68] sm:$0xff] }
 0x63e   :  { %v648_v44 = vsel %vm242_vm4, %v1038_v49, 0.0 }
 0x63f   :  { %v629_v50 = vpop.xlane.xlu0 %628  ;;  %649 = vadd.xlane.f32.xlu1 %v648_v44 }
 0x640   :  { %1043 = vrcp.f32 %v629_v50 }
 0x642   :  { %v1040_v22 = vpop.eup %1039 }
 0x643   :  { %v645_v23 = vsel %vm242_vm4, %v1040_v22, 0.0  ;;  %v1042_v24 = vpop.eup %1041 }
 0x644   :  { %646 = vadd.xlane.f32.xlu0 %v645_v23  ;;  %v660_v27 = vmul.f32 %v1042_v24, %v1026_v52  ;;  %v739_v52 = vpack.c.bf16 %v726_v47, %v725_v46 }
 0x646   :  { %v1044_v26 = vpop.eup %1043  ;;  %761 = vmatpush.bf16.msra.mxu0 %v739_v52 }
 0x647   :  { %v659_v48 = vmul.f32 %v1044_v26, %v1028_v34 }
 0x649   :  { %v667_v28 = vpack.c.bf16 %v660_v27, %v659_v48 }
 0x64b   :  { %944 = vmatmul.msk.bf16.vlgmr.msrb.gmra.mxu3 %vm242_vm4, %v667_v28  ;;  %v991_v28 = vld [vmem:[#allocation2 + $0x60] ss:$0 sm:$0xff] }
 0x661   :  { %v638_v29 = vpop.xlane.xlu1 %637 }
 0x662   :  { %1045 = vrcp.f32 %v638_v29 }
 0x666   :  { %v635_v30 = vpop.xlane.xlu0 %634 }
 0x667   :  { %1047 = vrcp.f32 %v635_v30 }
 0x668   :  { %v1046_v31 = vpop.eup %1045 }
 0x669   :  { %v662_v3 = vmul.f32 %v1046_v31, %v1030_v63 }
 0x66d   :  { %v1048_v32 = vpop.eup %1047 }
 0x66e   :  { %v661_v33 = vmul.f32 %v1048_v32, %v1032_v56  ;;  %v641_v36 = vpop.xlane.xlu0 %640  ;;  %v644_v37 = vpop.xlane.xlu1 %643 }
 0x66f   :  { %1049 = vrcp.f32 %v641_v36 }
 0x670   :  { %v668_v38 = vpack.c.bf16 %v662_v3, %v661_v33  ;;  %1051 = vrcp.f32 %v644_v37 }
 0x672   :  { %945 = vmatmul.msk.bf16.gmra.mxu3 %vm242_vm4, %v668_v38 }
 0x675   :  { %v1050_v35 = vpop.eup %1049 }
 0x676   :  { %v1052_v39 = vpop.eup %1051  ;;  %v663_v1 = vmul.f32 %v1050_v35, %v1034_v9 }
 0x677   :  { %v664_v8 = vmul.f32 %v1052_v39, %v1036_v10 }
 0x679   :  { %v669_v40 = vpack.c.bf16 %v664_v8, %v663_v1 }
 0x682   :  { %946 = vmatmul.msk.bf16.gmra.mxu3 %vm242_vm4, %v669_v40 }
 0x6b2   :  { %v650_v41 = vpop.xlane.xlu1 %649 }
 0x6b3   :  { %1053 = vrcp.f32 %v650_v41 }
 0x6b7   :  { %v647_v45 = vpop.xlane.xlu0 %646 }
 0x6b8   :  { %1055 = vrcp.f32 %v647_v45 }
 0x6b9   :  { %v1054_v51 = vpop.eup %1053 }
 0x6ba   :  { %v666_v34 = vmul.f32 %v1054_v51, %v1038_v49  ;;  %v731_v49 = vld [vmem:[#allocation2 + $0x70] sm:$0xff] }
 0x6bb   :  { %v795_v44 = vpack.c.bf16 %v731_v49, %v730_v20 }
 0x6bd   :  { %817 = vmatpush.bf16.msrb.mxu2 %v795_v44 }
 0x6be   :  { %v1056_v53 = vpop.eup %1055 }
 0x6bf   :  { %v665_v54 = vmul.f32 %v1056_v53, %v1040_v22 }
 0x6c1   :  { %v670_v55 = vpack.c.bf16 %v666_v34, %v665_v54 }
 0x6c3   :  { %947 = vmatmul.msk.bf16.gmra.mxu3 %vm242_vm4, %v670_v55 }
 0x6ce   :  { %v697_v57 = vpop.f32.mrf.mxu3 }
 0x6cf   :  { %v698_v59 = vadd.f32 %v990_v58, %v697_v57  ;;  %v992_v57 = vld [vmem:[#allocation2 + $0x88] ss:$0 sm:$0xff] }
 0x6d1   :  { %v717_v21 = vmax.f32 %v698_v59, 0.0 }
 0x6d6   :  { %v699_v60 = vpop.f32.mrf.mxu3 }
 0x6d7   :  { %v700_v61 = vadd.f32 %v990_v58, %v699_v60 }
 0x6d9   :  { %v718_v25 = vmax.f32 %v700_v61, 0.0 }
 0x6db   :  { %v735_v62 = vpack.c.bf16 %v718_v25, %v717_v21 }
 0x6dd   :  { %948 = vmatmul.msk.bf16.vlgmr.msra.gmra.mxu0 %vm400_vm10, %v735_v62 }
 0x6f5   :  { %v702_v63 = vpop.f32.mrf.mxu3 }
 0x6f6   :  { %v703_v0 = vadd.f32 %v990_v58, %v702_v63 }
 0x6f8   :  { %v719_v5 = vmax.f32 %v703_v0, 0.0 }
 0x6fd   :  { %v704_v2 = vpop.f32.mrf.mxu3 }
 0x6fe   :  { %v705_v4 = vadd.f32 %v990_v58, %v704_v2 }
 0x700   :  { %v720_v56 = vmax.f32 %v705_v4, 0.0 }
 0x702   :  { %v736_v6 = vpack.c.bf16 %v720_v56, %v719_v5 }
 0x704   :  { %949 = vmatmul.msk.bf16.gmra.mxu0 %vm400_vm10, %v736_v6 }
 0x705   :  { %v707_v7 = vpop.f32.mrf.mxu3 }
 0x706   :  { %v708_v9 = vadd.f32 %v990_v58, %v707_v7 }
 0x708   :  { %v721_v12 = vmax.f32 %v708_v9, 0.0 }
 0x70d   :  { %v709_v10 = vpop.f32.mrf.mxu3 }
 0x70e   :  { %v710_v11 = vadd.f32 %v990_v58, %v709_v10 }
 0x710   :  { %v722_v13 = vmax.f32 %v710_v11, 0.0 }
 0x712   :  { %v737_v14 = vpack.c.bf16 %v722_v13, %v721_v12 }
 0x714   :  { %950 = vmatmul.msk.bf16.gmra.mxu0 %vm400_vm10, %v737_v14 }
 0x746   :  { %v712_v19 = vpop.f32.mrf.mxu3 }
 0x747   :  { %v713_v50 = vadd.f32 %v990_v58, %v712_v19 }
 0x749   :  { %v723_v24 = vmax.f32 %v713_v50, 0.0 }
 0x74e   :  { %v714_v22 = vpop.f32.mrf.mxu3 }
 0x74f   :  { %v715_v23 = vadd.f32 %v990_v58, %v714_v22 }
 0x751   :  { %v724_v26 = vmax.f32 %v715_v23, 0.0 }
 0x753   :  { %v738_v27 = vpack.c.bf16 %v724_v26, %v723_v24 }
 0x755   :  { %951 = vmatmul.msk.bf16.gmra.mxu0 %vm400_vm10, %v738_v27 }
 0x75a   :  { %v763_v48 = vpop.f32.mrf.mxu0 }
 0x75b   :  { %v764_v29 = vadd.f32 %v991_v28, %v763_v48 }
 0x75d   :  { %v783_v32 = vmax.f32 %v764_v29, 0.0 }
 0x762   :  { %v765_v30 = vpop.f32.mrf.mxu0 }
 0x763   :  { %v766_v31 = vadd.f32 %v991_v28, %v765_v30 }
 0x765   :  { %v784_v33 = vmax.f32 %v766_v31, 0.0 }
 0x767   :  { %v791_v3 = vpack.c.bf16 %v784_v33, %v783_v32 }
 0x769   :  { %952 = vmatmul.msk.bf16.vlgmr.msrb.gmra.mxu2 %vm400_vm10, %v791_v3 }
 0x781   :  { %v768_v36 = vpop.f32.mrf.mxu0 }
 0x782   :  { %v769_v37 = vadd.f32 %v991_v28, %v768_v36 }
 0x784   :  { %v785_v39 = vmax.f32 %v769_v37, 0.0 }
 0x789   :  { %v770_v38 = vpop.f32.mrf.mxu0 }
 0x78a   :  { %v771_v35 = vadd.f32 %v991_v28, %v770_v38 }
 0x78c   :  { %v786_v1 = vmax.f32 %v771_v35, 0.0 }
 0x78e   :  { %v792_v8 = vpack.c.bf16 %v786_v1, %v785_v39 }
 0x790   :  { %953 = vmatmul.msk.bf16.gmra.mxu2 %vm400_vm10, %v792_v8 }
 0x791   :  { %v773_v40 = vpop.f32.mrf.mxu0 }
 0x792   :  { %v774_v41 = vadd.f32 %v991_v28, %v773_v40 }
 0x794   :  { %v787_v43 = vmax.f32 %v774_v41, 0.0 }
 0x799   :  { %v775_v45 = vpop.f32.mrf.mxu0 }
 0x79a   :  { %v776_v42 = vadd.f32 %v991_v28, %v775_v45 }
 0x79c   :  { %v788_v15 = vmax.f32 %v776_v42, 0.0 }
 0x79e   :  { %v793_v46 = vpack.c.bf16 %v788_v15, %v787_v43 }
 0x7a0   :  { %954 = vmatmul.msk.bf16.gmra.mxu2 %vm400_vm10, %v793_v46 }
 0x7d2   :  { %v778_v47 = vpop.f32.mrf.mxu0 }
 0x7d3   :  { %v779_v51 = vadd.f32 %v991_v28, %v778_v47 }
 0x7d5   :  { %v789_v54 = vmax.f32 %v779_v51, 0.0 }
 0x7da   :  { %v780_v52 = vpop.f32.mrf.mxu0 }
 0x7db   :  { %v781_v53 = vadd.f32 %v991_v28, %v780_v52 }
 0x7dd   :  { %v790_v34 = vmax.f32 %v781_v53, 0.0 }
 0x7df   :  { %v794_v55 = vpack.c.bf16 %v790_v34, %v789_v54 }
 0x7e1   :  { %955 = vmatmul.msk.bf16.gmra.mxu2 %vm400_vm10, %v794_v55 }
 0x7ec   :  { %v819_v58 = vpop.f32.mrf.mxu2 }
 0x7ed   :  { %v820_v59 = vadd.f32 %v992_v57, %v819_v58 }
 0x7ef   :  { %839 = vmax.xlane.f32.xlu0 %v820_v59 }
 0x7f4   :  { %v821_v60 = vpop.f32.mrf.mxu2 }
 0x7f5   :  { %v822_v61 = vadd.f32 %v992_v57, %v821_v60 }
 0x7f7   :  { %841 = vmax.xlane.f32.xlu1 %v822_v61 }
 0x813   :  { %v824_v21 = vpop.f32.mrf.mxu2 }
 0x814   :  { %v825_v25 = vadd.f32 %v992_v57, %v824_v21 }
 0x816   :  { %843 = vmax.xlane.f32.xlu0 %v825_v25 }
 0x81b   :  { %v826_v62 = vpop.f32.mrf.mxu2 }
 0x81c   :  { %v827_v63 = vadd.f32 %v992_v57, %v826_v62 }
 0x81e   :  { %845 = vmax.xlane.f32.xlu1 %v827_v63 }
 0x823   :  { %v829_v0 = vpop.f32.mrf.mxu2 }
 0x824   :  { %v830_v2 = vadd.f32 %v992_v57, %v829_v0 }
 0x826   :  { %847 = vmax.xlane.f32.xlu0 %v830_v2 }
 0x82b   :  { %v831_v4 = vpop.f32.mrf.mxu2 }
 0x82c   :  { %v832_v5 = vadd.f32 %v992_v57, %v831_v4 }
 0x82e   :  { %849 = vmax.xlane.f32.xlu1 %v832_v5 }
 0x862   :  { %v840_v56 = vpop.xlane.xlu0 %839 }
 0x863   :  { %v855_v6 = vsub.f32 %v820_v59, %v840_v56 }
 0x864   :  { %v834_v7 = vpop.f32.mrf.mxu2 }
 0x865   :  { %v863_v9 = vmul.f32 1.442695, %v855_v6  ;;  %v835_v10 = vadd.f32 %v992_v57, %v834_v7 }
 0x867   :  { %1057 = vpow2.f32 %v863_v9  ;;  %851 = vmax.xlane.f32.xlu0 %v835_v10 }
 0x86a   :  { %v842_v11 = vpop.xlane.xlu1 %841 }
 0x86b   :  { %v856_v12 = vsub.f32 %v822_v61, %v842_v11 }
 0x86c   :  { %v836_v13 = vpop.f32.mrf.mxu2 }
 0x86d   :  { %v1058_v14 = vpop.eup %1057  ;;  %v865_v16 = vmul.f32 1.442695, %v856_v12  ;;  %v837_v17 = vadd.f32 %v992_v57, %v836_v13 }
 0x86f   :  { %1059 = vpow2.f32 %v865_v16  ;;  %853 = vmax.xlane.f32.xlu1 %v837_v17  ;;  %879 = vadd.xlane.f32.xlu0 %v1058_v14 }
 0x875   :  { %v1060_v18 = vpop.eup %1059 }
 0x877   :  { %881 = vadd.xlane.f32.xlu1 %v1060_v18 }
 0x889   :  { %v844_v19 = vpop.xlane.xlu0 %843 }
 0x88a   :  { %v857_v20 = vsub.f32 %v825_v25, %v844_v19 }
 0x88c   :  { %v867_v49 = vmul.f32 1.442695, %v857_v20 }
 0x88e   :  { %1061 = vpow2.f32 %v867_v49 }
 0x891   :  { %v846_v44 = vpop.xlane.xlu1 %845 }
 0x892   :  { %v858_v50 = vsub.f32 %v827_v63, %v846_v44 }
 0x894   :  { %v1062_v22 = vpop.eup %1061  ;;  %v869_v23 = vmul.f32 1.442695, %v858_v50 }
 0x895   :  { %883 = vadd.xlane.f32.xlu0 %v1062_v22 }
 0x896   :  { %1063 = vpow2.f32 %v869_v23 }
 0x899   :  { %v848_v24 = vpop.xlane.xlu0 %847 }
 0x89a   :  { %v859_v26 = vsub.f32 %v830_v2, %v848_v24 }
 0x89c   :  { %v1064_v27 = vpop.eup %1063  ;;  %v871_v48 = vmul.f32 1.442695, %v859_v26 }
 0x89d   :  { %885 = vadd.xlane.f32.xlu2 %v1064_v27 }
 0x89e   :  { %1065 = vpow2.f32 %v871_v48 }
 0x8a1   :  { %v850_v28 = vpop.xlane.xlu1 %849 }
 0x8a2   :  { %v860_v29 = vsub.f32 %v832_v5, %v850_v28 }
 0x8a4   :  { %v1066_v30 = vpop.eup %1065  ;;  %v873_v31 = vmul.f32 1.442695, %v860_v29 }
 0x8a5   :  { %887 = vadd.xlane.f32.xlu1 %v1066_v30 }
 0x8a6   :  { %1067 = vpow2.f32 %v873_v31 }
 0x8ac   :  { %v1068_v32 = vpop.eup %1067 }
 0x8ad   :  { %889 = vadd.xlane.f32.xlu0 %v1068_v32 }
 0x8da   :  { %v852_v33 = vpop.xlane.xlu0 %851 }
 0x8db   :  { %v861_v3 = vsub.f32 %v835_v10, %v852_v33 }
 0x8dd   :  { %v875_v36 = vmul.f32 1.442695, %v861_v3 }
 0x8df   :  { %1069 = vpow2.f32 %v875_v36 }
 0x8e2   :  { %v854_v37 = vpop.xlane.xlu1 %853  ;;  %v880_v38 = vpop.xlane.xlu0 %879 }
 0x8e3   :  { %v862_v35 = vsub.f32 %v837_v17, %v854_v37  ;;  %1071 = vlog2.f32 %v880_v38 }
 0x8e5   :  { %v1070_v39 = vpop.eup %1069  ;;  %v877_v1 = vmul.f32 1.442695, %v862_v35 }
 0x8e6   :  { %891 = vadd.xlane.f32.xlu2 %v1070_v39 }
 0x8e7   :  { %1073 = vpow2.f32 %v877_v1 }
 0x8e9   :  { %v1072_v8 = vpop.eup %1071 }
 0x8ea   :  { %v896_v40 = vmul.f32 0.6931472, %v1072_v8  ;;  %v882_v41 = vpop.xlane.xlu1 %881 }
 0x8eb   :  { %1075 = vlog2.f32 %v882_v41 }
 0x8ec   :  { %v911_v45 = vsub.f32 %v855_v6, %v896_v40 }
 0x8ed   :  { %v1074_v42 = vpop.eup %1073 }
 0x8ee   :  { %919 = vst [vmem:[%s1345_s3] sm:$0xff] %v911_v45  ;;  %893 = vadd.xlane.f32.xlu1 %v1074_v42 }
 0x8f1   :  { %v1076_v43 = vpop.eup %1075 }
 0x8f2   :  { %v898_v15 = vmul.f32 0.6931472, %v1076_v43 }
 0x8f4   :  { %v912_v46 = vsub.f32 %v856_v12, %v898_v15 }
 0x8f6   :  { %920 = vst [vmem:[%s1345_s3 + $0x8] sm:$0xff] %v912_v46 }
 0x908   :  { %v884_v47 = vpop.xlane.xlu0 %883 }
 0x909   :  { %1077 = vlog2.f32 %v884_v47 }
 0x90f   :  { %v1078_v51 = vpop.eup %1077 }
 0x910   :  { %v900_v52 = vmul.f32 0.6931472, %v1078_v51  ;;  %v886_v53 = vpop.xlane.xlu2 %885 }
 0x911   :  { %1079 = vlog2.f32 %v886_v53 }
 0x912   :  { %v913_v54 = vsub.f32 %v857_v20, %v900_v52 }
 0x914   :  { %921 = vst [vmem:[%s1345_s3 + $0x10] sm:$0xff] %v913_v54 }
 0x917   :  { %v1080_v34 = vpop.eup %1079 }
 0x918   :  { %v902_v55 = vmul.f32 0.6931472, %v1080_v34  ;;  %v888_v57 = vpop.xlane.xlu1 %887 }
 0x919   :  { %1081 = vlog2.f32 %v888_v57 }
 0x91a   :  { %v914_v58 = vsub.f32 %v858_v50, %v902_v55 }
 0x91c   :  { %922 = vst [vmem:[%s1345_s3 + $0x18] sm:$0xff] %v914_v58 }
 0x91f   :  { %v1082_v59 = vpop.eup %1081 }
 0x920   :  { %v904_v60 = vmul.f32 0.6931472, %v1082_v59  ;;  %v890_v61 = vpop.xlane.xlu0 %889 }
 0x921   :  { %1083 = vlog2.f32 %v890_v61 }
 0x922   :  { %v915_v21 = vsub.f32 %v859_v26, %v904_v60 }
 0x924   :  { %923 = vst [vmem:[%s1345_s3 + $0x20] sm:$0xff] %v915_v21 }
 0x927   :  { %v1084_v25 = vpop.eup %1083 }
 0x928   :  { %v906_v62 = vmul.f32 0.6931472, %v1084_v25 }
 0x92a   :  { %v916_v63 = vsub.f32 %v860_v29, %v906_v62 }
 0x92c   :  { %924 = vst [vmem:[%s1345_s3 + $0x28] sm:$0xff] %v916_v63 }
 0x959   :  { %v892_v0 = vpop.xlane.xlu2 %891 }
 0x95a   :  { %1085 = vlog2.f32 %v892_v0 }
 0x960   :  { %v1086_v2 = vpop.eup %1085 }
 0x961   :  { %v908_v4 = vmul.f32 0.6931472, %v1086_v2  ;;  %v894_v5 = vpop.xlane.xlu1 %893 }
 0x962   :  { %1087 = vlog2.f32 %v894_v5 }
 0x963   :  { %v917_v56 = vsub.f32 %v861_v3, %v908_v4 }
 0x965   :  { %925 = vst [vmem:[%s1345_s3 + $0x30] sm:$0xff] %v917_v56 }
 0x968   :  { %v1088_v6 = vpop.eup %1087 }
 0x969   :  { %v910_v7 = vmul.f32 0.6931472, %v1088_v6 }
 0x96b   :  { %v918_v9 = vsub.f32 %v862_v35, %v910_v7 }
 0x96d   :  { %926 = vst [vmem:[%s1345_s3 + $0x38] sm:$0xff] %v918_v9 }
 0x96e   :  { %931 = vsyncpa [#allocation3], 1 }

</bundles_post_ra>
